<compile_context>
chip_gen: v6e
topology: v6e:2x2x1
jax: 0.10.0
libtpu: 0.0.40
codegen_flags: <defaults>
</compile_context>

<pallas_src>
import functools

import jax
import jax.numpy as jnp
from jax.experimental import pallas as pl
from jax.experimental.pallas import tpu as pltpu


def _dqn_kernel(x_ref, w1_ref, b1_ref, w2_ref, b2_ref, o_ref):
    # fc1: MXU matmul with f32 accumulation, then bias + ReLU on the VPU.
    # The contracting dim (in_states) need not be 128-aligned; Mosaic masks the
    # ragged contraction internally, so x is never padded through HBM.
    h = jnp.dot(x_ref[...], w1_ref[...], preferred_element_type=jnp.float32)
    h = jnp.maximum(h + b1_ref[...], 0.0)
    # out layer: hidden activations stay in f32 end-to-end.
    o = jnp.dot(h, w2_ref[...], preferred_element_type=jnp.float32)
    o_ref[...] = (o + b2_ref[...]).astype(o_ref.dtype)


@functools.partial(jax.jit, static_argnames=("batch_tile",))
def dqn_forward(x, w1, b1, w2, b2, *, batch_tile=4096):
    B, K = x.shape
    H = w1.shape[1]
    A = w2.shape[1]
    out_dtype = jnp.promote_types(x.dtype, jnp.float32)  # never downcast the f32 acc

    # Honest (unpadded) cost hint for XLA's scheduler.
    flops = 2 * B * (K * H + H * A)
    bytes_accessed = int(
        x.dtype.itemsize * B * K                      # streamed x
        + out_dtype.itemsize * B * A                  # streamed out
        + 4 * (K * H + H + H * A + A)                 # resident f32 weights/biases
    )
    cost = pl.CostEstimate(flops=flops, transcendentals=0,
                           bytes_accessed=bytes_accessed)

    if B <= batch_tile:
        # ---- small-batch (RL acting) path: single invocation, no grid, every
        # operand fully VMEM-resident, zero wrapper-side pad/slice ops. -------
        return pl.pallas_call(
            _dqn_kernel,
            out_shape=jax.ShapeDtypeStruct((B, A), out_dtype),
            in_specs=[pl.BlockSpec(memory_space=pltpu.MemorySpace.VMEM)] * 5,
            out_specs=pl.BlockSpec(memory_space=pltpu.MemorySpace.VMEM),
            cost_estimate=cost,
        )(x, w1, b1, w2, b2)

    # ---- large-batch path: stream x/out over the batch axis with full-K /
    # full-A blocks (no HBM padding); weights & biases resident across steps. -
    TB = batch_tile
    grid = (pl.cdiv(B, TB),)  # ragged last block: OOB output rows masked on writeback
    return pl.pallas_call(
        _dqn_kernel,
        out_shape=jax.ShapeDtypeStruct((B, A), out_dtype),
        grid_spec=pltpu.PrefetchScalarGridSpec(
            num_scalar_prefetch=0,
            grid=grid,
            in_specs=[
                pl.BlockSpec((TB, K), lambda i: (i, 0)),   # x: streamed, unpadded K
                pl.BlockSpec((K, H), lambda i: (0, 0)),    # w1: resident
                pl.BlockSpec((1, H), lambda i: (0, 0)),    # b1: resident
                pl.BlockSpec((H, A), lambda i: (0, 0)),    # w2: resident
                pl.BlockSpec((1, A), lambda i: (0, 0)),    # b2: resident
            ],
            out_specs=pl.BlockSpec((TB, A), lambda i: (i, 0)),  # unpadded A
        ),
        compiler_params=pltpu.CompilerParams(
            dimension_semantics=("parallel",)),  # shards batch tiles over v7x's 2 TCs
        cost_estimate=cost,
    )(x, w1, b1, w2, b2)


def init_dqn_params(key, in_states, out_actions, hidden_layer=128):
    """Deterministic init mimicking torch.nn.Linear default (U[-1/sqrt(fan_in), +])."""
    k1, k2, k3, k4 = jax.random.split(key, 4)
    bound1 = 1.0 / jnp.sqrt(in_states)
    bound2 = 1.0 / jnp.sqrt(hidden_layer)
    w1 = jax.random.uniform(k1, (in_states, hidden_layer), jnp.float32, -bound1, bound1)
    b1 = jax.random.uniform(k2, (1, hidden_layer), jnp.float32, -bound1, bound1)
    w2 = jax.random.uniform(k3, (hidden_layer, out_actions), jnp.float32, -bound2, bound2)
    b2 = jax.random.uniform(k4, (1, out_actions), jnp.float32, -bound2, bound2)
    return w1, b1, w2, b2


if __name__ == "__main__":
    key = jax.random.PRNGKey(0)
    kx, kp, kb = jax.random.split(key, 3)

    batch = 2
    in_states = 8
    out_actions = 4
    hidden_layer = 128

    w1, b1, w2, b2 = init_dqn_params(kp, in_states, out_actions, hidden_layer)

    def ref_fn(xv):
        return jnp.maximum(xv @ w1 + b1, 0.0) @ w2 + b2

    # --- small-batch (single-block, no-grid) path ---
    x_small = jax.random.normal(kx, (batch, in_states), jnp.float32)
    out_small = jax.block_until_ready(dqn_forward(x_small, w1, b1, w2, b2))
    assert out_small.shape == (batch, out_actions)
    assert jnp.allclose(out_small, ref_fn(x_small), atol=1e-5, rtol=1e-5)

    # --- large-batch (batch-tiled, parallel grid) path, B not a tile multiple
    # (exercises the ragged last block) ---
    big_batch = 1000
    x_big = jax.random.normal(kb, (big_batch, in_states), jnp.float32)
    out_big = jax.block_until_ready(dqn_forward(x_big, w1, b1, w2, b2, batch_tile=256))
    assert out_big.shape == (big_batch, out_actions)
    assert jnp.allclose(out_big, ref_fn(x_big), atol=1e-4, rtol=1e-4)

    print("KERNEL_OK")
</pallas_src>

<mosaic_0001>
module attributes {stable_mosaic.version = 11 : i64} {
  func.func @_dqn_kernel(%arg0: memref<2x8xf32, #tpu.memory_space<vmem>>, %arg1: memref<8x128xf32, #tpu.memory_space<vmem>>, %arg2: memref<1x128xf32, #tpu.memory_space<vmem>>, %arg3: memref<128x4xf32, #tpu.memory_space<vmem>>, %arg4: memref<1x4xf32, #tpu.memory_space<vmem>>, %arg5: memref<2x4xf32, #tpu.memory_space<vmem>>) attributes {dimension_semantics = [], scalar_prefetch = 0 : i64, scratch_operands = 0 : i64, tpu.core_type = #tpu.core_type<tc>} {
    %c0 = arith.constant 0 : index
    %c0_0 = arith.constant 0 : index
    %0 = vector.load %arg0[%c0, %c0_0] : memref<2x8xf32, #tpu.memory_space<vmem>>, vector<2x8xf32>
    %c0_1 = arith.constant 0 : index
    %c0_2 = arith.constant 0 : index
    %1 = vector.load %arg1[%c0_1, %c0_2] : memref<8x128xf32, #tpu.memory_space<vmem>>, vector<8x128xf32>
    %cst = arith.constant dense<0.000000e+00> : vector<2x128xf32>
    %2 = tpu.matmul %0, %1, %cst {dimension_numbers = #tpu.dot_dimension_numbers<[1], [0], [0], [1], [0, 0, 1, 1], [], []>} : vector<2x8xf32>, vector<8x128xf32>, vector<2x128xf32> -> vector<2x128xf32>
    %c0_3 = arith.constant 0 : index
    %c0_4 = arith.constant 0 : index
    %3 = vector.load %arg2[%c0_3, %c0_4] : memref<1x128xf32, #tpu.memory_space<vmem>>, vector<1x128xf32>
    %4 = vector.broadcast %3 : vector<1x128xf32> to vector<2x128xf32>
    %5 = arith.addf %2, %4 : vector<2x128xf32>
    %cst_5 = arith.constant 0.000000e+00 : f32
    %6 = vector.broadcast %cst_5 : f32 to vector<2x128xf32>
    %7 = arith.maximumf %5, %6 : vector<2x128xf32>
    %c0_6 = arith.constant 0 : index
    %c0_7 = arith.constant 0 : index
    %8 = vector.load %arg3[%c0_6, %c0_7] : memref<128x4xf32, #tpu.memory_space<vmem>>, vector<128x4xf32>
    %cst_8 = arith.constant dense<0.000000e+00> : vector<2x4xf32>
    %9 = tpu.matmul %7, %8, %cst_8 {dimension_numbers = #tpu.dot_dimension_numbers<[1], [0], [0], [1], [0, 0, 1, 1], [], []>} : vector<2x128xf32>, vector<128x4xf32>, vector<2x4xf32> -> vector<2x4xf32>
    %c0_9 = arith.constant 0 : index
    %c0_10 = arith.constant 0 : index
    %10 = vector.load %arg4[%c0_9, %c0_10] : memref<1x4xf32, #tpu.memory_space<vmem>>, vector<1x4xf32>
    %11 = vector.broadcast %10 : vector<1x4xf32> to vector<2x4xf32>
    %12 = arith.addf %9, %11 : vector<2x4xf32>
    %c0_11 = arith.constant 0 : index
    %c0_12 = arith.constant 0 : index
    %13 = vector.load %arg5[%c0_11, %c0_12] : memref<2x4xf32, #tpu.memory_space<vmem>>, vector<2x4xf32>
    tpu.vector_store %arg5[%c0_11, %c0_12], %12 {strides = array<i32>} : memref<2x4xf32, #tpu.memory_space<vmem>>, vector<2x4xf32>,
    return
  }
}

</mosaic_0001>

<bundles_post_ra>
// kernel: dqn_forward.1
= control target key start
LH: loop header
LB: loop body
LE: loop exit
PB: predicated region body
PF: predicated region fallthrough
CT: control target
= control target key end

     0   :  { %vm30_vm0 = vcmask 64512   ;;  %v301_v2 = vmov 0.0   ;;  %vm302_vm1 = vmmov 0   ;;  %s397_s0 = inlined_call_operand.vmem [shape: f32[2,8], index: 0, kind: input, shape index: {}]   ;;  %s398_s1 = inlined_call_operand.vmem [shape: f32[8,128], index: 1, kind: input, shape index: {}]   ;;  %s399_s2 = inlined_call_operand.vmem [shape: f32[1,128], index: 2, kind: input, shape index: {}]   ;;  %s400_s3 = inlined_call_operand.vmem [shape: f32[128,4], index: 3, kind: input, shape index: {}]   ;;  %s401_s4 = inlined_call_operand.vmem [shape: f32[1,4], index: 4, kind: input, shape index: {}]   ;;  %s402_s5 = inlined_call_operand.hbm [shape: f32[2,4], index: 5, kind: output, shape index: {}]  }
   0x1   :  { %v22_v0 = vld [vmem:[%s398_s1] sm:$0xff]  ;;  %236 = vmatprep.subr.mxu0 %v301_v2  ;;  %238 = vmatprep.mubr.msk.f32.mxu0 %vm302_vm1, %v301_v2  ;;  %v120_v3 = vld [vmem:[%s400_s3 + $0x78] sm:$0xff]  ;;  %v119_v4 = vld [vmem:[%s400_s3 + $0x70] sm:$0xff] }
   0x2   :  { %v21_v1 = vld [vmem:[%s397_s0] sm:$0x3]  ;;  %237 = vmatpush3.msra.mxu0 %v22_v0  ;;  %241 = vmatprep.subr.mxu1 %v301_v2  ;;  %v118_v5 = vld [vmem:[%s400_s3 + $0x68] sm:$0xff] }
   0x3   :  { %239 = vmatmul.mubr.msk.f32.vlgmr.msra.gmra.mxu0 %vm30_vm0, %v21_v1  ;;  %242 = vmatpush3.msra.mxu1 %v120_v3 }
   0x4   :  { %243 = vmatprep.subr.mxu1 %v301_v2  ;;  %273 = vmatprep.mubr.msk.f32.mxu1 %vm302_vm1, %v301_v2 }
   0x5   :  { %244 = vmatpush3.msra.mxu1 %v119_v4 }
   0x6   :  { %10 = vsyncpa [#allocation3], 0  ;;  %245 = vmatprep.subr.mxu1 %v301_v2  ;;  %v117_v6 = vld [vmem:[%s400_s3 + $0x60] sm:$0xff]  ;;  %v116_v7 = vld [vmem:[%s400_s3 + $0x58] sm:$0xff]  ;;  %s303_s29 = smov [#allocation2]   ;;  %vm198_vm2 = vcmask 25600  }
   0x7   :  { %246 = vmatpush3.msra.mxu1 %v118_v5  ;;  %v115_v8 = vld [vmem:[%s400_s3 + $0x50] sm:$0xff]  ;;  %v114_v9 = vld [vmem:[%s400_s3 + $0x48] sm:$0xff]  ;;  %v113_v10 = vld [vmem:[%s400_s3 + $0x40] sm:$0xff]  ;;  %s206_s30 = sshll.u32 %s303_s29, 4  ;;  %s207_s30 = int_to_ptr.vmem [resolvable:$true] %s206_s30 }
   0x8   :  { %247 = vmatprep.subr.mxu1 %v301_v2  ;;  %v112_v11 = vld [vmem:[%s400_s3 + $0x38] sm:$0xff]  ;;  %v111_v12 = vld [vmem:[%s400_s3 + $0x30] sm:$0xff]  ;;  %v110_v13 = vld [vmem:[%s400_s3 + $0x28] sm:$0xff]  ;;  %p284_p1 = scmp.lt.s32.totalorder %s207_s30, %s207_s30 }
   0x9   :  { %248 = vmatpush3.msra.mxu1 %v117_v6  ;;  %v109_v14 = vld [vmem:[%s400_s3 + $0x20] sm:$0xff]  ;;  %v108_v15 = vld [vmem:[%s400_s3 + $0x18] sm:$0xff]  ;;  %v107_v16 = vld [vmem:[%s400_s3 + $0x10] sm:$0xff] }
   0xa   :  { %249 = vmatprep.subr.mxu1 %v301_v2  ;;  %v106_v17 = vld [vmem:[%s400_s3 + $0x8] sm:$0xff]  ;;  %v105_v18 = vld [vmem:[%s400_s3] sm:$0xff]  ;;  %s279_s3 = scalar_lea.vmem %s207_s30, 32 }
   0xb   :  { %250 = vmatpush3.msra.mxu1 %v116_v7  ;;  %v214_v19 = vld [vmem:[%s399_s2] ss:$0 sm:$0xff]  ;;  %p280_p0 = scmp.ne.s32.totalorder %s207_s30, %s279_s3  ;;  %p285_p2 = scmp.lt.s32.totalorder %s279_s3, %s279_s3 }
   0xc   :  { %251 = vmatprep.subr.mxu1 %v301_v2  ;;  %v216_v24 = vld [vmem:[%s401_s4] ss:$0 sm:$0xff] }
   0xd   :  { %252 = vmatpush3.msra.mxu1 %v115_v8  ;;  %p286_p3 = por %p285_p2, %p284_p1 }
   0xe   :  { %253 = vmatprep.subr.mxu1 %v301_v2 }
   0xf   :  { %254 = vmatpush3.msra.mxu1 %v114_v9  ;;  %p287_p4 = pnand %p286_p3, %p280_p0 }
  0x10   :  { %255 = vmatprep.subr.mxu1 %v301_v2 }
  0x11   :  { %256 = vmatpush3.msra.mxu1 %v113_v10 }
  0x12   :  { %257 = vmatprep.subr.mxu1 %v301_v2 }
  0x13   :  { %258 = vmatpush3.msra.mxu1 %v112_v11 }
  0x14   :  { %259 = vmatprep.subr.mxu1 %v301_v2 }
  0x15   :  { %260 = vmatpush3.msra.mxu1 %v111_v12 }
  0x16   :  { %261 = vmatprep.subr.mxu1 %v301_v2 }
  0x17   :  { %262 = vmatpush3.msra.mxu1 %v110_v13 }
  0x18   :  { %263 = vmatprep.subr.mxu1 %v301_v2 }
  0x19   :  { %264 = vmatpush3.msra.mxu1 %v109_v14 }
  0x1a   :  { %265 = vmatprep.subr.mxu1 %v301_v2 }
  0x1b   :  { %266 = vmatpush3.msra.mxu1 %v108_v15 }
  0x1c   :  { %267 = vmatprep.subr.mxu1 %v301_v2 }
  0x1d   :  { %268 = vmatpush3.msra.mxu1 %v107_v16 }
  0x1e   :  { %269 = vmatprep.subr.mxu1 %v301_v2 }
  0x1f   :  { %270 = vmatpush3.msra.mxu1 %v106_v17 }
  0x20   :  { %271 = vmatprep.subr.mxu1 %v301_v2 }
  0x21   :  { %272 = vmatpush3.msra.mxu1 %v105_v18 }
  0xc3   :  { %v100_v20 = vpop.f32.mrf.mxu0 }
  0xc4   :  { %v101_v21 = vadd.f32 %v214_v19, %v100_v20 }
  0xc5   :  { %v240_v22 = vpop.f32.mrf.mxu0 }
  0xc6   :  { %v104_v23 = vmax.f32 %v101_v21, 0.0 }
  0xc8   :  { %274 = vmatmul.mubr.f32.vlgmr.msra.gmra.mxu1 %v104_v23 }
 0x188   :  { %v194_v25 = vpop.f32.mrf.mxu1 }
 0x189   :  { %v195_v26 = vadd.f32 %v216_v24, %v194_v25 }
 0x18a   :  { %v275_v27 = vpop.f32.mrf.mxu1 }
 0x18b   :  { %199 = vst.msk [vmem:[#allocation2] sm:$0x3] %vm198_vm2, %v195_v26 }
 0x18c   :  { %290 = shalt.err (!%p287_p4)
}
 0x18d   :  { %209 = dma.vmem_to_hbm [thread:$0]  %s207_s30, 32, %s402_s5, [#allocation3]  }
 0x18e   :  { %299 = dma.done.wait [#allocation3], 32  }
 0x18f   :  { %300 = vsyncadd [#allocation3], 4294967264 }
 0x190   :  { %213 = vsyncpa [#allocation3], 1 }

</bundles_post_ra>
